<compile_context>
chip_gen: v7x
topology: tpu7x:2x2x1
jax: 0.10.0
libtpu: 0.0.40
codegen_flags: <defaults>
</compile_context>

<pallas_src>
import functools

import jax
import jax.numpy as jnp
from jax import lax
from jax.experimental import pallas as pl
from jax.experimental.pallas import tpu as pltpu


def _sqdiff_partial_kernel(pred_ref, true_ref, out_ref, *, tile_rows, rows_valid,
                           ragged):
    """Accumulate per-(sublane, lane) partial sums of (pred-true)^2.

    out_ref: (8, cols) f32 output block, resident across the inner grid axis
    (same block index for every inner step), used as the accumulator.
    """
    j = pl.program_id(1)

    @pl.when(j == 0)
    def _():
        out_ref[...] = jnp.zeros_like(out_ref)

    d = pred_ref[...].astype(jnp.float32) - true_ref[...].astype(jnp.float32)
    dd = d * d

    if ragged:
        # The last row-block may extend past the end of the slab; OOB reads are
        # unspecified, so zero those rows via a row-index mask (select, so any
        # NaN/Inf garbage cannot propagate).
        block_idx = pl.program_id(0) * pl.num_programs(1) + j
        row0 = block_idx * tile_rows
        row_ids = row0 + lax.broadcasted_iota(jnp.int32, dd.shape, 0)
        dd = jnp.where(row_ids < rows_valid, dd, 0.0)

    # Fold the tile's rows into 8 sublanes: pure VPU adds (co-issue with vld),
    # no cross-lane / XLU work in the hot loop.
    out_ref[...] += dd.reshape(tile_rows // 8, 8, dd.shape[1]).sum(axis=0)


def rmse_loss(y_pred, y_true, *, tile_rows=1024, cols=512, outer=2):
    """RMSE over all elements of y_pred / y_true (any matching shape)."""
    assert y_pred.shape == y_true.shape
    n_total = y_pred.size
    assert n_total > 0

    # Flatten in native dtype (no f32 upcast in HBM — halves bytes for bf16).
    flat_p = jnp.ravel(y_pred)
    flat_t = jnp.ravel(y_true)

    # Pad only up to a multiple of (8 * cols) so the slab reshapes cleanly with
    # a sublane-aligned row count.  Padded elements are zero in BOTH arrays so
    # they contribute 0 to the sum; the divisor stays the true n_total.
    unit = 8 * cols
    rem = n_total % unit
    if rem:
        pad = unit - rem
        flat_p = jnp.pad(flat_p, (0, pad))
        flat_t = jnp.pad(flat_t, (0, pad))
    rows = flat_p.size // cols
    p2 = flat_p.reshape(rows, cols)
    t2 = flat_t.reshape(rows, cols)

    # Tile sizing: as large as the input allows, multiple of 8 sublanes.
    tile_rows = min(tile_rows, rows)
    tile_rows = max(8, (tile_rows // 8) * 8)
    n_blocks = pl.cdiv(rows, tile_rows)
    ragged = (rows % tile_rows) != 0

    # Optional outer "parallel" split of the reduction (uses both TensorCores
    # on v7x; harmless no-op on single-core v5e/v6e).  Only taken when it
    # divides the block count exactly, so no fully out-of-bounds blocks exist.
    if outer > 1 and n_blocks >= 2 * outer and n_blocks % outer == 0:
        n_outer = outer
    else:
        n_outer = 1
    inner = n_blocks // n_outer

    kernel = functools.partial(
        _sqdiff_partial_kernel,
        tile_rows=tile_rows,
        rows_valid=rows,
        ragged=ragged,
    )

    partials = pl.pallas_call(
        kernel,
        out_shape=jax.ShapeDtypeStruct((n_outer * 8, cols), jnp.float32),
        grid_spec=pltpu.PrefetchScalarGridSpec(
            num_scalar_prefetch=0,
            grid=(n_outer, inner),
            in_specs=[
                pl.BlockSpec((tile_rows, cols), lambda o, j: (o * inner + j, 0)),
                pl.BlockSpec((tile_rows, cols), lambda o, j: (o * inner + j, 0)),
            ],
            out_specs=pl.BlockSpec((8, cols), lambda o, j: (o, 0)),
        ),
        compiler_params=pltpu.CompilerParams(
            dimension_semantics=("parallel", "arbitrary"),
        ),
    )(p2, t2)

    # Tiny final cross-lane reduce + divide + sqrt in plain JAX (done once,
    # not per grid step).
    return jnp.sqrt(jnp.sum(partials) / jnp.float32(n_total))


if __name__ == "__main__":
    key = jax.random.PRNGKey(0)
    k1, k2 = jax.random.split(key)

    # Small shapes consistent with a generic prediction/target pair.
    y_pred = jax.random.normal(k1, (2, 4, 16, 16), dtype=jnp.float32)
    y_true = jax.random.normal(k2, (2, 4, 16, 16), dtype=jnp.float32)

    out = rmse_loss(y_pred, y_true)
    out = jax.block_until_ready(out)
    ref = jnp.sqrt(jnp.mean((y_pred - y_true) ** 2))
    assert jnp.allclose(out, ref, rtol=1e-5, atol=1e-6), (out, ref)

    # Second check: size not a multiple of the slab width (exercises the
    # zero-pad + true-count-divisor semantics).
    k3, k4 = jax.random.split(k2)
    a = jax.random.normal(k3, (3, 7, 11), dtype=jnp.float32)
    b = jax.random.normal(k4, (3, 7, 11), dtype=jnp.float32)
    out2 = jax.block_until_ready(rmse_loss(a, b))
    ref2 = jnp.sqrt(jnp.mean((a - b) ** 2))
    assert jnp.allclose(out2, ref2, rtol=1e-5, atol=1e-6), (out2, ref2)

    print("KERNEL_OK")
</pallas_src>

<mosaic_0001>
module attributes {stable_mosaic.version = 11 : i64} {
  func.func @_sqdiff_partial_kernel(%arg0: i32, %arg1: i32, %arg2: memref<8x512xf32, #tpu.memory_space<vmem>>, %arg3: memref<8x512xf32, #tpu.memory_space<vmem>>, %arg4: memref<8x512xf32, #tpu.memory_space<vmem>>) attributes {dimension_semantics = [#tpu.dimension_semantics<parallel>, #tpu.dimension_semantics<arbitrary>], iteration_bounds = array<i64: 1, 1>, scalar_prefetch = 0 : i64, scratch_operands = 0 : i64, tpu.core_type = #tpu.core_type<tc>, window_params = [{transform_indices = @transform_0, window_bounds = array<i64: 8, 512>}, {transform_indices = @transform_1, window_bounds = array<i64: 8, 512>}, {transform_indices = @transform_2, window_bounds = array<i64: 8, 512>}]} {
    %c0_i32 = arith.constant 0 : i32
    %0 = arith.cmpi eq, %arg1, %c0_i32 : i32
    %1 = arith.extui %0 : i1 to i32
    %c0_i32_0 = arith.constant 0 : i32
    %2 = arith.cmpi ne, %1, %c0_i32_0 : i32
    scf.if %2 {
      %cst_8 = arith.constant 0.000000e+00 : f32
      %12 = vector.broadcast %cst_8 : f32 to vector<8x512xf32>
      %c0_9 = arith.constant 0 : index
      %c0_10 = arith.constant 0 : index
      %13 = vector.load %arg4[%c0_9, %c0_10] : memref<8x512xf32, #tpu.memory_space<vmem>>, vector<8x512xf32>
      tpu.vector_store %arg4[%c0_9, %c0_10], %12 {strides = array<i32>} : memref<8x512xf32, #tpu.memory_space<vmem>>, vector<8x512xf32>,
    } else {
    }
    %c0 = arith.constant 0 : index
    %c0_1 = arith.constant 0 : index
    %3 = vector.load %arg2[%c0, %c0_1] : memref<8x512xf32, #tpu.memory_space<vmem>>, vector<8x512xf32>
    %c0_2 = arith.constant 0 : index
    %c0_3 = arith.constant 0 : index
    %4 = vector.load %arg3[%c0_2, %c0_3] : memref<8x512xf32, #tpu.memory_space<vmem>>, vector<8x512xf32>
    %5 = arith.subf %3, %4 : vector<8x512xf32>
    %6 = arith.mulf %5, %5 : vector<8x512xf32>
    %c0_4 = arith.constant 0 : index
    %c0_5 = arith.constant 0 : index
    %7 = vector.load %arg4[%c0_4, %c0_5] : memref<8x512xf32, #tpu.memory_space<vmem>>, vector<8x512xf32>
    %8 = vector.shape_cast %6 : vector<8x512xf32> to vector<1x8x512xf32>
    %cst = arith.constant dense<0.000000e+00> : vector<8x512xf32>
    %9 = vector.multi_reduction <add>, %8, %cst [0] : vector<1x8x512xf32> to vector<8x512xf32>
    %10 = arith.addf %7, %9 : vector<8x512xf32>
    %c0_6 = arith.constant 0 : index
    %c0_7 = arith.constant 0 : index
    %11 = vector.load %arg4[%c0_6, %c0_7] : memref<8x512xf32, #tpu.memory_space<vmem>>, vector<8x512xf32>
    tpu.vector_store %arg4[%c0_6, %c0_7], %10 {strides = array<i32>} : memref<8x512xf32, #tpu.memory_space<vmem>>, vector<8x512xf32>,
    return
  }
  func.func @transform_0(%arg0: i32, %arg1: i32) -> (i32, i32) {
    %c1_i32 = arith.constant 1 : i32
    %0 = arith.muli %arg0, %c1_i32 : i32
    %1 = arith.addi %0, %arg1 : i32
    %c0_i32 = arith.constant 0 : i32
    %c0_i32_0 = arith.constant 0 : i32
    return %1, %c0_i32 : i32, i32
  }
  func.func @transform_1(%arg0: i32, %arg1: i32) -> (i32, i32) {
    %c1_i32 = arith.constant 1 : i32
    %0 = arith.muli %arg0, %c1_i32 : i32
    %1 = arith.addi %0, %arg1 : i32
    %c0_i32 = arith.constant 0 : i32
    %c0_i32_0 = arith.constant 0 : i32
    return %1, %c0_i32 : i32, i32
  }
  func.func @transform_2(%arg0: i32, %arg1: i32) -> (i32, i32) {
    %c0_i32 = arith.constant 0 : i32
    %c0_i32_0 = arith.constant 0 : i32
    return %arg0, %c0_i32 : i32, i32
  }
}

</mosaic_0001>

<bundles_post_ra>
// kernel: tpu_custom_call.1
= control target key start
LH: loop header
LB: loop body
LE: loop exit
PB: predicated region body
PF: predicated region fallthrough
CT: control target
= control target key end

     0   :  { %7 = vsyncpa [#allocation3], 0  ;;  %s232_s0 = inlined_call_operand.hbm [shape: f32[8,512], index: 0, kind: input, shape index: {}]   ;;  %s233_s1 = inlined_call_operand.hbm [shape: f32[8,512], index: 1, kind: input, shape index: {}]   ;;  %s234_s2 = inlined_call_operand.hbm [shape: f32[8,512], index: 2, kind: output, shape index: {}]  }
   0x1   :  { %8 = vsyncpa [#allocation6], 0 }
   0x2   :  { %9 = vsyncpa [#allocation4], 0  ;;  %s178_s9 = smov [#allocation2]   ;;  %s179_s11 = smov [#allocation5]  }
   0x3   :  { %s20_s10 = sshll.u32 %s178_s9, 4  ;;  %s34_s12 = sshll.u32 %s179_s11, 4  ;;  %s21_s10 = int_to_ptr.vmem [resolvable:$true] %s20_s10  ;;  %s35_s12 = int_to_ptr.vmem [resolvable:$true] %s34_s12 }
   0x4   :  { %s106_s15 = scalar_lea.hbm %s232_s0, 512 }
   0x5   :  { %p107_p0 = scmp.ne.s32.totalorder %s232_s0, %s106_s15  ;;  %p110_p1 = scmp.lt.u32.totalorder %s106_s15, %s232_s0 }
   0x7   :  { %p112_p2 = pnand %p110_p1, %p107_p0 }
   0x9   :  { %115 = shalt.err (!%p112_p2)
}
   0xa   :  { %s116_s20 = scalar_lea.vmem %s21_s10, 512  ;;  %p121_p4 = scmp.lt.s32.totalorder %s21_s10, %s21_s10 }
   0xb   :  { %p117_p3 = scmp.ne.s32.totalorder %s21_s10, %s116_s20  ;;  %p122_p5 = scmp.lt.s32.totalorder %s116_s20, %s116_s20 }
   0xd   :  { %p123_p6 = por %p122_p5, %p121_p4 }
   0xf   :  { %p124_p7 = pnand %p123_p6, %p117_p3 }
  0x11   :  { %127 = shalt.err (!%p124_p7)
}
  0x12   :  { %23 = dma.hbm_to_vmem [thread:$0]  %s232_s0, 512, %s21_s10, [#allocation3]  }
  0x13   :  { %s128_s25 = scalar_lea.hbm %s233_s1, 512 }
  0x14   :  { %p129_p8 = scmp.ne.s32.totalorder %s233_s1, %s128_s25  ;;  %p132_p9 = scmp.lt.u32.totalorder %s128_s25, %s233_s1 }
  0x16   :  { %p134_p10 = pnand %p132_p9, %p129_p8 }
  0x18   :  { %137 = shalt.err (!%p134_p10)
}
  0x19   :  { %s138_s30 = scalar_lea.vmem %s35_s12, 512  ;;  %p143_p12 = scmp.lt.s32.totalorder %s35_s12, %s35_s12 }
  0x1a   :  { %p139_p11 = scmp.ne.s32.totalorder %s35_s12, %s138_s30  ;;  %p144_p13 = scmp.lt.s32.totalorder %s138_s30, %s138_s30 }
  0x1c   :  { %p145_p0 = por %p144_p13, %p143_p12 }
  0x1e   :  { %p146_p1 = pnand %p145_p0, %p139_p11 }
  0x20   :  { %149 = shalt.err (!%p146_p1)
}
  0x21   :  { %37 = dma.hbm_to_vmem [thread:$0]  %s233_s1, 512, %s35_s12, [#allocation6]  }
  0x22   :  { %172 = dma.done.wait [#allocation3], 512  }
  0x23   :  { %173 = vsyncadd [#allocation3], 4294966784 }
  0x24   :  { %174 = dma.done.wait [#allocation6], 512  }
  0x25   :  { %175 = vsyncadd [#allocation6], 4294966784  ;;  %v54_v0 = vld [vmem:[#allocation2] sm:$0xff]  ;;  %v55_v2 = vld [vmem:[#allocation2 + $0x8] sm:$0xff]  ;;  %s180_s1 = smov [#allocation7]  }
  0x26   :  { %v58_v1 = vld [vmem:[#allocation5] sm:$0xff]  ;;  %v59_v4 = vld [vmem:[#allocation5 + $0x8] sm:$0xff]  ;;  %v56_v5 = vld [vmem:[#allocation2 + $0x10] sm:$0xff]  ;;  %s92_s4 = sshll.u32 %s180_s1, 4  ;;  %s93_s4 = int_to_ptr.vmem [resolvable:$true] %s92_s4 }
  0x27   :  { %v62_v3 = vsub.f32 %v54_v0, %v58_v1  ;;  %v60_v6 = vld [vmem:[#allocation5 + $0x10] sm:$0xff]  ;;  %v63_v7 = vsub.f32 %v55_v2, %v59_v4  ;;  %v57_v9 = vld [vmem:[#allocation2 + $0x18] sm:$0xff]  ;;  %s150_s5 = scalar_lea.vmem %s93_s4, 512  ;;  %p155_p3 = scmp.lt.s32.totalorder %s93_s4, %s93_s4 }
  0x28   :  { %v64_v8 = vsub.f32 %v56_v5, %v60_v6  ;;  %v61_v10 = vld [vmem:[#allocation5 + $0x18] sm:$0xff]  ;;  %p151_p2 = scmp.ne.s32.totalorder %s93_s4, %s150_s5  ;;  %p156_p4 = scmp.lt.s32.totalorder %s150_s5, %s150_s5 }
  0x29   :  { %v66_v11 = vmul.f32 %v62_v3, %v62_v3  ;;  %v65_v12 = vsub.f32 %v57_v9, %v61_v10  ;;  %v67_v13 = vmul.f32 %v63_v7, %v63_v7 }
  0x2a   :  { %v68_v14 = vmul.f32 %v64_v8, %v64_v8  ;;  %p157_p5 = por %p156_p4, %p155_p3 }
  0x2b   :  { %v69_v15 = vmul.f32 %v65_v12, %v65_v12  ;;  %82 = vst [vmem:[#allocation7] sm:$0xff] %v66_v11  ;;  %83 = vst [vmem:[#allocation7 + $0x8] sm:$0xff] %v67_v13 }
  0x2c   :  { %84 = vst [vmem:[#allocation7 + $0x10] sm:$0xff] %v68_v14  ;;  %p158_p6 = pnand %p157_p5, %p151_p2 }
  0x2d   :  { %85 = vst [vmem:[#allocation7 + $0x18] sm:$0xff] %v69_v15 }
  0x2e   :  { %161 = shalt.err (!%p158_p6)
}
  0x2f   :  { %s162_s8 = scalar_lea.hbm %s234_s2, 512 }
  0x30   :  { %p163_p7 = scmp.ne.s32.totalorder %s234_s2, %s162_s8  ;;  %p166_p8 = scmp.lt.u32.totalorder %s162_s8, %s234_s2 }
  0x32   :  { %p168_p9 = pnand %p166_p8, %p163_p7 }
  0x34   :  { %171 = shalt.err (!%p168_p9)
}
  0x35   :  { %95 = dma.vmem_to_hbm [thread:$0]  %s93_s4, 512, %s234_s2, [#allocation4]  }
  0x36   :  { %176 = dma.done.wait [#allocation4], 512  }
  0x37   :  { %177 = vsyncadd [#allocation4], 4294966784 }
  0x38   :  { %99 = vsyncpa [#allocation3], 1 }
  0x39   :  { %100 = vsyncpa [#allocation6], 1 }
  0x3a   :  { %101 = vsyncpa [#allocation4], 1 }

</bundles_post_ra>
